<compile_context>
chip_gen: v7x
topology: tpu7x:2x2x1
jax: 0.10.0
libtpu: 0.0.40
codegen_flags: <defaults>
</compile_context>

<pallas_src>
import functools

import jax
import jax.numpy as jnp
from jax.experimental import pallas as pl
from jax.experimental.pallas import tpu as pltpu

_EPS = 1e-5
_LEAKY_SLOPE = 0.01
_LANE = 128


def _round_up(v, m):
    return (v + m - 1) // m * m


def _vmem_limit_bytes():
    """Chip-aware VMEM budget: capacity - 8 MiB headroom, capped at 100 MiB."""
    cap = None
    try:
        cap = int(pltpu.get_tpu_info().vmem_capacity_bytes)
    except Exception:
        cap = None
    if not cap or cap <= 0:
        cap = 64 * 1024 * 1024  # conservative fallback (v7x has 64 MiB / core)
    return int(min(cap - 8 * 1024 * 1024, 100 * 1024 * 1024))


def _pick_tile_b(B, Dp, Ip, Lp, vmem_limit, tile_b_max):
    """Pick a batch-tile size: multiple of 16, as large as the VMEM budget
    allows (fewer grid steps, better MXU fill), never larger than needed."""
    fmax = max(Dp, Ip, Lp)
    # generous per-row estimate: double-buffered bf16 in/out tiles, f32 final
    # output tile and f32 temporaries.
    per_row = 16 * fmax + 8 * Dp
    # largest resident weight, double-buffered (constant index_map blocks are
    # only DMA'd once; pipeline_mode=pl.Buffered(1) could halve this further).
    weight_bytes = 2 * 2 * max(Dp * Ip, Ip * Lp, Lp * Ip, Ip * Dp)
    budget = max(vmem_limit - weight_bytes - (2 << 20), per_row * 16)
    tile_b = min(tile_b_max, budget // per_row)
    tile_b = max(16, (tile_b // 16) * 16)
    tile_b = min(tile_b, _round_up(B, 16))
    return int(tile_b)


def _const_spec(shape):
    # Constant index_map: parameter block is DMA'd once and stays resident in
    # VMEM for the whole grid.
    return pl.BlockSpec(shape, lambda i: (0,) * len(shape))


# --------------------------------------------------------------------------
# Kernels
# --------------------------------------------------------------------------
def _stats_layer_kernel(*refs, batch_size, tile_b, n_tiles, fuse_prev, mask_last):
    """One Linear layer:
       [apply previous folded BN scale/shift + LeakyReLU] -> matmul (MXU)
       -> cache pre-BN activation z (bf16) -> per-tile partial BN stats."""
    if fuse_prev:
        h_ref, scale_ref, shift_ref, w_ref, b_ref, z_ref, stats_ref = refs
    else:
        h_ref, w_ref, b_ref, z_ref, stats_ref = refs
        scale_ref = shift_ref = None

    tile = pl.program_id(0)

    h = h_ref[...].astype(jnp.float32)
    if fuse_prev:
        h = h * scale_ref[...] + shift_ref[...]
        h = jnp.where(h >= 0, h, _LEAKY_SLOPE * h)        # LeakyReLU

    z = jnp.dot(h.astype(jnp.bfloat16), w_ref[...],
                preferred_element_type=jnp.float32) + b_ref[...]
    z_bf = z.astype(jnp.bfloat16)
    z_ref[...] = z_bf                                     # activation cache

    # statistics are computed on exactly the values the next layer will read
    zf = z_bf.astype(jnp.float32)
    fout = zf.shape[1]

    def write_stats(zv):
        s = jnp.sum(zv, axis=0, keepdims=True)            # (1, F)
        ss = jnp.sum(zv * zv, axis=0, keepdims=True)      # (1, F)
        row = jax.lax.broadcasted_iota(jnp.int32, (8, fout), 0)
        stats_ref[...] = jnp.where(row == 0, s, 0.0) + jnp.where(row == 1, ss, 0.0)

    if mask_last:
        # only the last tile can contain padded batch rows
        @pl.when(tile == n_tiles - 1)
        def _():
            r = jax.lax.broadcasted_iota(jnp.int32, (tile_b, 1), 0) + tile * tile_b
            write_stats(zf * (r < batch_size).astype(jnp.float32))

        @pl.when(tile != n_tiles - 1)
        def _():
            write_stats(zf)
    else:
        write_stats(zf)


def _final_kernel(z_ref, scale_ref, shift_ref, w_ref, b_ref, out_ref):
    """Apply folded BN3 + ReLU (== ReLU(LeakyReLU(.))) and the last Linear."""
    h = z_ref[...].astype(jnp.float32) * scale_ref[...] + shift_ref[...]
    h = jnp.maximum(h, 0.0)
    y = jnp.dot(h.astype(jnp.bfloat16), w_ref[...],
                preferred_element_type=jnp.float32) + b_ref[...]
    out_ref[...] = y.astype(out_ref.dtype)


# --------------------------------------------------------------------------
# pallas_call wrappers
# --------------------------------------------------------------------------
def _stats_layer(h_in, scale, shift, w, b, *, batch_size, tile_b, vmem_limit):
    Bp, Fin = h_in.shape
    Fout = w.shape[1]
    n_tiles = Bp // tile_b
    fuse_prev = scale is not None
    mask_last = batch_size != Bp

    kernel = functools.partial(
        _stats_layer_kernel, batch_size=batch_size, tile_b=tile_b,
        n_tiles=n_tiles, fuse_prev=fuse_prev, mask_last=mask_last)

    args = [h_in]
    in_specs = [pl.BlockSpec((tile_b, Fin), lambda i: (i, 0))]
    if fuse_prev:
        args += [scale, shift]
        in_specs += [_const_spec((1, Fin)), _const_spec((1, Fin))]
    args += [w, b]
    in_specs += [_const_spec(w.shape), _const_spec((1, Fout))]

    z, stats = pl.pallas_call(
        kernel,
        out_shape=(jax.ShapeDtypeStruct((Bp, Fout), jnp.bfloat16),
                   jax.ShapeDtypeStruct((n_tiles, 8, Fout), jnp.float32)),
        grid=(n_tiles,),
        in_specs=in_specs,
        out_specs=(pl.BlockSpec((tile_b, Fout), lambda i: (i, 0)),
                   pl.BlockSpec((None, 8, Fout), lambda i: (i, 0, 0))),
        compiler_params=pltpu.CompilerParams(
            # per-tile partial stats -> no cross-tile carry -> megacore-safe
            dimension_semantics=("parallel",),
            vmem_limit_bytes=vmem_limit),
    )(*args)
    return z, stats


def _final_layer(z_in, scale, shift, w, b, *, tile_b, vmem_limit,
                 out_dtype=jnp.float32):
    Bp, Fin = z_in.shape
    Fout = w.shape[1]
    n_tiles = Bp // tile_b
    return pl.pallas_call(
        _final_kernel,
        out_shape=jax.ShapeDtypeStruct((Bp, Fout), out_dtype),
        grid=(n_tiles,),
        in_specs=[pl.BlockSpec((tile_b, Fin), lambda i: (i, 0)),
                  _const_spec((1, Fin)),
                  _const_spec((1, Fin)),
                  _const_spec(w.shape),
                  _const_spec((1, Fout))],
        out_specs=pl.BlockSpec((tile_b, Fout), lambda i: (i, 0)),
        compiler_params=pltpu.CompilerParams(
            dimension_semantics=("parallel",),
            vmem_limit_bytes=vmem_limit),
    )(z_in, scale, shift, w, b)


def _fold_bn(stats, gamma, beta, batch_size):
    """Fold full-batch BN statistics into one per-feature scale/shift (tiny,
    runs as plain XLA between pallas_calls)."""
    s = jnp.sum(stats[:, 0, :], axis=0, keepdims=True)     # (1, F)
    ss = jnp.sum(stats[:, 1, :], axis=0, keepdims=True)    # (1, F)
    mean = s / batch_size
    var = jnp.maximum(ss / batch_size - mean * mean, 0.0)
    scale = jax.lax.rsqrt(var + _EPS) * gamma
    shift = beta - mean * scale
    return scale, shift


# --------------------------------------------------------------------------
# Forward pass
# --------------------------------------------------------------------------
def deep_autoencoder_forward(x, params, *, tile_b_max=2048,
                             out_dtype=jnp.float32):
    """x: [B, dim_input] float32.  params: unpadded list from init_params."""
    (w1, b1, g1, be1, w2, b2, g2, be2, w3, b3, g3, be3, w4, b4) = params
    B, D = x.shape
    I = w1.shape[1]
    L = w2.shape[1]

    Dp = _round_up(D, _LANE)
    Ip = _round_up(I, _LANE)
    Lp = _round_up(L, _LANE)

    vmem_limit = _vmem_limit_bytes()
    tile_b = _pick_tile_b(B, Dp, Ip, Lp, vmem_limit, tile_b_max)
    Bp = _round_up(B, tile_b)

    def pad_w(w, r, c):
        return jnp.pad(w, ((0, r - w.shape[0]),
                           (0, c - w.shape[1]))).astype(jnp.bfloat16)

    def pad_v(v, c):  # [1, f] row vectors (bias / gamma / beta), zero-padded
        return jnp.pad(v, ((0, 0), (0, c - v.shape[1]))).astype(jnp.float32)

    xp = jnp.pad(x.astype(jnp.float32),
                 ((0, Bp - B), (0, Dp - D))).astype(jnp.bfloat16)

    common = dict(batch_size=B, tile_b=tile_b, vmem_limit=vmem_limit)

    # encoder: Linear -> BN -> LeakyReLU, Linear -> BN -> LeakyReLU
    z1, st1 = _stats_layer(xp, None, None, pad_w(w1, Dp, Ip), pad_v(b1, Ip),
                           **common)
    sc1, sh1 = _fold_bn(st1, pad_v(g1, Ip), pad_v(be1, Ip), B)

    z2, st2 = _stats_layer(z1, sc1, sh1, pad_w(w2, Ip, Lp), pad_v(b2, Lp),
                           **common)
    sc2, sh2 = _fold_bn(st2, pad_v(g2, Lp), pad_v(be2, Lp), B)

    # decoder: Linear -> BN -> LeakyReLU -> ReLU (== ReLU), Linear
    z3, st3 = _stats_layer(z2, sc2, sh2, pad_w(w3, Lp, Ip), pad_v(b3, Ip),
                           **common)
    sc3, sh3 = _fold_bn(st3, pad_v(g3, Ip), pad_v(be3, Ip), B)

    out = _final_layer(z3, sc3, sh3, pad_w(w4, Ip, Dp), pad_v(b4, Dp),
                       tile_b=tile_b, vmem_limit=vmem_limit,
                       out_dtype=out_dtype)
    return out[:B, :D]


# --------------------------------------------------------------------------
# Synthetic init + pure-JAX reference
# --------------------------------------------------------------------------
def init_params(key, dim_input, intermediate, latent_size):
    """Deterministic synthetic init, PyTorch-style (uniform +-1/sqrt(fan_in))."""
    def linear_init(key, fan_in, fan_out):
        kw, kb = jax.random.split(key)
        bound = 1.0 / jnp.sqrt(float(fan_in))
        w = jax.random.uniform(kw, (fan_in, fan_out), jnp.float32, -bound, bound)
        b = jax.random.uniform(kb, (1, fan_out), jnp.float32, -bound, bound)
        return w, b

    def bn_init(fan_out):
        return jnp.ones((1, fan_out), jnp.float32), jnp.zeros((1, fan_out), jnp.float32)

    k1, k2, k3, k4 = jax.random.split(key, 4)
    w1, b1 = linear_init(k1, dim_input, intermediate)
    g1, be1 = bn_init(intermediate)
    w2, b2 = linear_init(k2, intermediate, latent_size)
    g2, be2 = bn_init(latent_size)
    w3, b3 = linear_init(k3, latent_size, intermediate)
    g3, be3 = bn_init(intermediate)
    w4, b4 = linear_init(k4, intermediate, dim_input)
    return [w1, b1, g1, be1, w2, b2, g2, be2, w3, b3, g3, be3, w4, b4]


def reference_forward(x, params):
    """Pure-JAX reference with the same mixed-precision policy as the kernel
    (bf16 MXU operands, bf16 activation caches, f32 BN math)."""
    (w1, b1, g1, be1, w2, b2, g2, be2, w3, b3, g3, be3, w4, b4) = params
    B = x.shape[0]

    def lin(h, w, b):
        return jnp.dot(h.astype(jnp.bfloat16), w.astype(jnp.bfloat16),
                       preferred_element_type=jnp.float32) + b

    def cache(z):  # mirror the kernel's bf16 activation cache
        return z.astype(jnp.bfloat16).astype(jnp.float32)

    def bn(z, g, be):
        mean = jnp.sum(z, axis=0, keepdims=True) / B
        var = jnp.maximum(jnp.sum(z * z, axis=0, keepdims=True) / B - mean * mean, 0.0)
        scale = jax.lax.rsqrt(var + _EPS) * g
        return z * scale + (be - mean * scale)

    def lrelu(h):
        return jnp.where(h >= 0, h, _LEAKY_SLOPE * h)

    z1 = cache(lin(x, w1, b1))
    h1 = lrelu(bn(z1, g1, be1))
    z2 = cache(lin(h1, w2, b2))
    h2 = lrelu(bn(z2, g2, be2))
    z3 = cache(lin(h2, w3, b3))
    h3 = jnp.maximum(bn(z3, g3, be3), 0.0)   # relu(leaky_relu(.)) == relu(.)
    return lin(h3, w4, b4)


if __name__ == "__main__":
    key = jax.random.PRNGKey(0)
    kx, kp = jax.random.split(key)

    dim_input, intermediate, latent_size = 32, 64, 16
    params = init_params(kp, dim_input, intermediate, latent_size)

    # Second config forces multiple batch tiles + a partial last tile to
    # exercise the parallel per-tile BN-statistics path and the last-tile mask.
    for batch, tile_b_max in ((8, 2048), (40, 16)):
        x = jax.random.normal(kx, (batch, dim_input), jnp.float32)
        out = jax.block_until_ready(
            deep_autoencoder_forward(x, params, tile_b_max=tile_b_max))
        ref = reference_forward(x, params)
        assert out.shape == (batch, dim_input)
        assert bool(jnp.all(jnp.isfinite(out)))
        assert jnp.allclose(out, ref, atol=2e-2, rtol=2e-2), "mismatch vs reference"

    print("KERNEL_OK")
</pallas_src>

<mosaic_0001>
module attributes {stable_mosaic.version = 11 : i64} {
  func.func @_stats_layer_kernel(%arg0: i32, %arg1: memref<16x128xbf16, #tpu.memory_space<vmem>>, %arg2: memref<128x128xbf16, #tpu.memory_space<vmem>>, %arg3: memref<1x128xf32, #tpu.memory_space<vmem>>, %arg4: memref<16x128xbf16, #tpu.memory_space<vmem>>, %arg5: memref<1x8x128xf32, #tpu.memory_space<vmem>>) attributes {dimension_semantics = [#tpu.dimension_semantics<parallel>], iteration_bounds = array<i64: 1>, scalar_prefetch = 0 : i64, scratch_operands = 0 : i64, tpu.core_type = #tpu.core_type<tc>, window_params = [{transform_indices = @transform_0, window_bounds = array<i64: 16, 128>}, {pipeline_mode = #tpu.pipeline_mode<synchronous>, transform_indices = @transform_1, window_bounds = array<i64: 128, 128>}, {pipeline_mode = #tpu.pipeline_mode<synchronous>, transform_indices = @transform_2, window_bounds = array<i64: 1, 128>}, {transform_indices = @transform_3, window_bounds = array<i64: 16, 128>}, {transform_indices = @transform_4, window_bounds = array<i64: 1, 8, 128>}]} {
    %c0 = arith.constant 0 : index
    %c0_0 = arith.constant 0 : index
    %0 = vector.load %arg1[%c0, %c0_0] : memref<16x128xbf16, #tpu.memory_space<vmem>>, vector<16x128xbf16>
    %1 = arith.extf %0 : vector<16x128xbf16> to vector<16x128xf32>
    %2 = arith.truncf %1 : vector<16x128xf32> to vector<16x128xbf16>
    %c0_1 = arith.constant 0 : index
    %c0_2 = arith.constant 0 : index
    %3 = vector.load %arg2[%c0_1, %c0_2] : memref<128x128xbf16, #tpu.memory_space<vmem>>, vector<128x128xbf16>
    %cst = arith.constant dense<0.000000e+00> : vector<16x128xf32>
    %4 = tpu.matmul %2, %3, %cst {dimension_numbers = #tpu.dot_dimension_numbers<[1], [0], [0], [1], [0, 0, 1, 1], [], []>} : vector<16x128xbf16>, vector<128x128xbf16>, vector<16x128xf32> -> vector<16x128xf32>
    %c0_3 = arith.constant 0 : index
    %c0_4 = arith.constant 0 : index
    %5 = vector.load %arg3[%c0_3, %c0_4] : memref<1x128xf32, #tpu.memory_space<vmem>>, vector<1x128xf32>
    %6 = vector.broadcast %5 : vector<1x128xf32> to vector<16x128xf32>
    %7 = arith.addf %4, %6 : vector<16x128xf32>
    %8 = arith.truncf %7 : vector<16x128xf32> to vector<16x128xbf16>
    %c0_5 = arith.constant 0 : index
    %c0_6 = arith.constant 0 : index
    %9 = vector.load %arg4[%c0_5, %c0_6] : memref<16x128xbf16, #tpu.memory_space<vmem>>, vector<16x128xbf16>
    tpu.vector_store %arg4[%c0_5, %c0_6], %8 {strides = array<i32>} : memref<16x128xbf16, #tpu.memory_space<vmem>>, vector<16x128xbf16>,
    %10 = arith.extf %8 : vector<16x128xbf16> to vector<16x128xf32>
    %c0_i32 = arith.constant 0 : i32
    %11 = arith.cmpi eq, %arg0, %c0_i32 : i32
    %12 = arith.extui %11 : i1 to i32
    %c0_i32_7 = arith.constant 0 : i32
    %13 = arith.cmpi ne, %12, %c0_i32_7 : i32
    scf.if %13 {
      %17 = tpu.iota {dimensions = array<i32: 0>} : vector<16x1xi32>
      %c16_i32 = arith.constant 16 : i32
      %18 = arith.muli %arg0, %c16_i32 : i32
      %19 = vector.broadcast %18 : i32 to vector<16x1xi32>
      %20 = arith.addi %17, %19 : vector<16x1xi32>
      %c8_i32 = arith.constant 8 : i32
      %21 = vector.broadcast %c8_i32 : i32 to vector<16x1xi32>
      %22 = arith.cmpi slt, %20, %21 : vector<16x1xi32>
      %23 = arith.extui %22 : vector<16x1xi1> to vector<16x1xi32>
      %24 = arith.sitofp %23 : vector<16x1xi32> to vector<16x1xf32>
      %25 = vector.broadcast %24 : vector<16x1xf32> to vector<16x128xf32>
      %26 = arith.mulf %10, %25 : vector<16x128xf32>
      %cst_10 = arith.constant dense<0.000000e+00> : vector<128xf32>
      %27 = vector.multi_reduction <add>, %26, %cst_10 [0] : vector<16x128xf32> to vector<128xf32>
      %28 = vector.shape_cast %27 : vector<128xf32> to vector<1x128xf32>
      %29 = arith.mulf %26, %26 : vector<16x128xf32>
      %cst_11 = arith.constant dense<0.000000e+00> : vector<128xf32>
      %30 = vector.multi_reduction <add>, %29, %cst_11 [0] : vector<16x128xf32> to vector<128xf32>
      %31 = vector.shape_cast %30 : vector<128xf32> to vector<1x128xf32>
      %32 = tpu.iota {dimensions = array<i32: 0>} : vector<8x128xi32>
      %c0_i32_12 = arith.constant 0 : i32
      %33 = vector.broadcast %c0_i32_12 : i32 to vector<8x128xi32>
      %34 = arith.cmpi eq, %32, %33 : vector<8x128xi32>
      %cst_13 = arith.constant 0.000000e+00 : f32
      %35 = vector.shape_cast %28 : vector<1x128xf32> to vector<1x128xf32>
      %36 = vector.broadcast %35 : vector<1x128xf32> to vector<8x128xf32>
      %37 = vector.broadcast %cst_13 : f32 to vector<8x128xf32>
      %38 = arith.select %34, %36, %37 : vector<8x128xi1>, vector<8x128xf32>
      %c1_i32 = arith.constant 1 : i32
      %39 = vector.broadcast %c1_i32 : i32 to vector<8x128xi32>
      %40 = arith.cmpi eq, %32, %39 : vector<8x128xi32>
      %cst_14 = arith.constant 0.000000e+00 : f32
      %41 = vector.shape_cast %31 : vector<1x128xf32> to vector<1x128xf32>
      %42 = vector.broadcast %41 : vector<1x128xf32> to vector<8x128xf32>
      %43 = vector.broadcast %cst_14 : f32 to vector<8x128xf32>
      %44 = arith.select %40, %42, %43 : vector<8x128xi1>, vector<8x128xf32>
      %45 = arith.addf %38, %44 : vector<8x128xf32>
      %c0_15 = arith.constant 0 : index
      %c0_16 = arith.constant 0 : index
      %c0_17 = arith.constant 0 : index
      %46 = vector.load %arg5[%c0_15, %c0_16, %c0_17] : memref<1x8x128xf32, #tpu.memory_space<vmem>>, vector<1x8x128xf32>
      %47 = vector.shape_cast %46 : vector<1x8x128xf32> to vector<8x128xf32>
      %48 = vector.shape_cast %45 : vector<8x128xf32> to vector<1x8x128xf32>
      tpu.vector_store %arg5[%c0_15, %c0_16, %c0_17], %48 {strides = array<i32>} : memref<1x8x128xf32, #tpu.memory_space<vmem>>, vector<1x8x128xf32>,
    } else {
    }
    %c0_i32_8 = arith.constant 0 : i32
    %14 = arith.cmpi ne, %arg0, %c0_i32_8 : i32
    %15 = arith.extui %14 : i1 to i32
    %c0_i32_9 = arith.constant 0 : i32
    %16 = arith.cmpi ne, %15, %c0_i32_9 : i32
    scf.if %16 {
      %cst_10 = arith.constant dense<0.000000e+00> : vector<128xf32>
      %17 = vector.multi_reduction <add>, %10, %cst_10 [0] : vector<16x128xf32> to vector<128xf32>
      %18 = vector.shape_cast %17 : vector<128xf32> to vector<1x128xf32>
      %19 = arith.mulf %10, %10 : vector<16x128xf32>
      %cst_11 = arith.constant dense<0.000000e+00> : vector<128xf32>
      %20 = vector.multi_reduction <add>, %19, %cst_11 [0] : vector<16x128xf32> to vector<128xf32>
      %21 = vector.shape_cast %20 : vector<128xf32> to vector<1x128xf32>
      %22 = tpu.iota {dimensions = array<i32: 0>} : vector<8x128xi32>
      %c0_i32_12 = arith.constant 0 : i32
      %23 = vector.broadcast %c0_i32_12 : i32 to vector<8x128xi32>
      %24 = arith.cmpi eq, %22, %23 : vector<8x128xi32>
      %cst_13 = arith.constant 0.000000e+00 : f32
      %25 = vector.shape_cast %18 : vector<1x128xf32> to vector<1x128xf32>
      %26 = vector.broadcast %25 : vector<1x128xf32> to vector<8x128xf32>
      %27 = vector.broadcast %cst_13 : f32 to vector<8x128xf32>
      %28 = arith.select %24, %26, %27 : vector<8x128xi1>, vector<8x128xf32>
      %c1_i32 = arith.constant 1 : i32
      %29 = vector.broadcast %c1_i32 : i32 to vector<8x128xi32>
      %30 = arith.cmpi eq, %22, %29 : vector<8x128xi32>
      %cst_14 = arith.constant 0.000000e+00 : f32
      %31 = vector.shape_cast %21 : vector<1x128xf32> to vector<1x128xf32>
      %32 = vector.broadcast %31 : vector<1x128xf32> to vector<8x128xf32>
      %33 = vector.broadcast %cst_14 : f32 to vector<8x128xf32>
      %34 = arith.select %30, %32, %33 : vector<8x128xi1>, vector<8x128xf32>
      %35 = arith.addf %28, %34 : vector<8x128xf32>
      %c0_15 = arith.constant 0 : index
      %c0_16 = arith.constant 0 : index
      %c0_17 = arith.constant 0 : index
      %36 = vector.load %arg5[%c0_15, %c0_16, %c0_17] : memref<1x8x128xf32, #tpu.memory_space<vmem>>, vector<1x8x128xf32>
      %37 = vector.shape_cast %36 : vector<1x8x128xf32> to vector<8x128xf32>
      %38 = vector.shape_cast %35 : vector<8x128xf32> to vector<1x8x128xf32>
      tpu.vector_store %arg5[%c0_15, %c0_16, %c0_17], %38 {strides = array<i32>} : memref<1x8x128xf32, #tpu.memory_space<vmem>>, vector<1x8x128xf32>,
    } else {
    }
    return
  }
  func.func @transform_0(%arg0: i32) -> (i32, i32) {
    %c0_i32 = arith.constant 0 : i32
    %c0_i32_0 = arith.constant 0 : i32
    return %arg0, %c0_i32 : i32, i32
  }
  func.func @transform_1(%arg0: i32) -> (i32, i32) {
    %c0_i32 = arith.constant 0 : i32
    %c0_i32_0 = arith.constant 0 : i32
    %c0_i32_1 = arith.constant 0 : i32
    return %c0_i32, %c0_i32_0 : i32, i32
  }
  func.func @transform_2(%arg0: i32) -> (i32, i32) {
    %c0_i32 = arith.constant 0 : i32
    %c0_i32_0 = arith.constant 0 : i32
    %c0_i32_1 = arith.constant 0 : i32
    return %c0_i32, %c0_i32_0 : i32, i32
  }
  func.func @transform_3(%arg0: i32) -> (i32, i32) {
    %c0_i32 = arith.constant 0 : i32
    %c0_i32_0 = arith.constant 0 : i32
    return %arg0, %c0_i32 : i32, i32
  }
  func.func @transform_4(%arg0: i32) -> (i32, i32, i32) {
    %c0_i32 = arith.constant 0 : i32
    %c0_i32_0 = arith.constant 0 : i32
    %c0_i32_1 = arith.constant 0 : i32
    return %arg0, %c0_i32, %c0_i32_0 : i32, i32, i32
  }
}

</mosaic_0001>

<bundles_post_ra>
// kernel: tpu_custom_call.1
= control target key start
LH: loop header
LB: loop body
LE: loop exit
PB: predicated region body
PF: predicated region fallthrough
CT: control target
= control target key end

     0   :  { %10 = vsyncpa [#allocation3], 0  ;;  %s534_s0 = inlined_call_operand.hbm [shape: bf16[16,128], index: 0, kind: input, shape index: {}]   ;;  %s535_s1 = inlined_call_operand.hbm [shape: bf16[128,128], index: 1, kind: input, shape index: {}]   ;;  %s536_s2 = inlined_call_operand.vmem [shape: f32[1,128], index: 2, kind: input, shape index: {}]   ;;  %s537_s3 = inlined_call_operand.hbm [shape: bf16[16,128], index: 3, kind: output, shape index: {0}]   ;;  %s538_s4 = inlined_call_operand.hbm [shape: f32[1,8,128], index: 4, kind: output, shape index: {1}]  }
   0x1   :  { %11 = vsyncpa [#allocation6], 0 }
   0x2   :  { %12 = vsyncpa [#allocation4], 0 }
   0x3   :  { %13 = vsyncpa [#allocation9], 0  ;;  %s441_s15 = smov [#allocation2]   ;;  %s345_s19 = scalar_lea.hbm %s534_s0, 128 }
   0x4   :  { %s19_s16 = sshll.u32 %s441_s15, 4  ;;  %p346_p0 = scmp.ne.s32.totalorder %s534_s0, %s345_s19  ;;  %s20_s16 = int_to_ptr.vmem [resolvable:$true] %s19_s16 }
   0x5   :  { %p349_p1 = scmp.lt.u32.totalorder %s345_s19, %s534_s0 }
   0x7   :  { %p351_p2 = pnand %p349_p1, %p346_p0 }
   0x9   :  { %354 = shalt.err (!%p351_p2)
}
   0xa   :  { %s355_s24 = scalar_lea.vmem %s20_s16, 128  ;;  %p360_p4 = scmp.lt.s32.totalorder %s20_s16, %s20_s16 }
   0xb   :  { %p356_p3 = scmp.ne.s32.totalorder %s20_s16, %s355_s24  ;;  %p361_p5 = scmp.lt.s32.totalorder %s355_s24, %s355_s24 }
   0xd   :  { %p362_p6 = por %p361_p5, %p360_p4 }
   0xf   :  { %p363_p7 = pnand %p362_p6, %p356_p3 }
  0x11   :  { %366 = shalt.err (!%p363_p7)
}
  0x12   :  { %s442_s25 = smov 64   ;;  %s443_s26 = smov 4  }
  0x13   :  { %25 = dma.hbm_to_vmem [thread:$0]  %s534_s0, 128, %s20_s16, [#allocation3], %s442_s25, %s442_s25, %s443_s26  }
  0x14   :  { %s444_s29 = smov [#allocation5]   ;;  %s367_s7 = scalar_lea.hbm %s535_s1, 1024 }
  0x15   :  { %s31_s30 = sshll.u32 %s444_s29, 4  ;;  %p368_p8 = scmp.ne.s32.totalorder %s535_s1, %s367_s7  ;;  %s32_s30 = int_to_ptr.vmem [resolvable:$true] %s31_s30 }
  0x16   :  { %p371_p9 = scmp.lt.u32.totalorder %s367_s7, %s535_s1 }
  0x18   :  { %p373_p10 = pnand %p371_p9, %p368_p8 }
  0x1a   :  { %376 = shalt.err (!%p373_p10)
}
  0x1b   :  { %s377_s12 = scalar_lea.vmem %s32_s30, 1024  ;;  %p382_p12 = scmp.lt.s32.totalorder %s32_s30, %s32_s30 }
  0x1c   :  { %p378_p11 = scmp.ne.s32.totalorder %s32_s30, %s377_s12  ;;  %p383_p13 = scmp.lt.s32.totalorder %s377_s12, %s377_s12 }
  0x1e   :  { %p384_p0 = por %p383_p13, %p382_p12 }
  0x20   :  { %p385_p1 = pnand %p384_p0, %p378_p11 }
  0x22   :  { %388 = shalt.err (!%p385_p1)
}
  0x23   :  { %37 = dma.hbm_to_vmem [thread:$0]  %s535_s1, 1024, %s32_s30, [#allocation6], %s442_s25, %s442_s25, %s443_s26  }
  0x24   :  { %433 = dma.done.wait [#allocation3], 128  }
  0x25   :  { %434 = vsyncadd [#allocation3], 4294967168 }
  0x26   :  { %435 = dma.done.wait [#allocation6], 1024  }
  0x27   :  { %436 = vsyncadd [#allocation6], 4294966272  ;;  %v445_v0 = vmov 0.0   ;;  %vm446_vm0 = vmmov 0   ;;  %v336_v1 = vld [vmem:[#allocation5] sm:$0xff]   ;;  %v337_v2 = vld [vmem:[#allocation5 + $0x8] sm:$0xff]  }
  0x28   :  { %308 = vmatprep.subr.bf16.mxu0 %v445_v0  ;;  %324 = vmatprep.mubr.msk.bf16.mxu0 %vm446_vm0, %v445_v0  ;;  %v338_v3 = vld [vmem:[#allocation5 + $0x10] sm:$0xff]   ;;  %v339_v4 = vld [vmem:[#allocation5 + $0x18] sm:$0xff]   ;;  %v340_v5 = vld [vmem:[#allocation5 + $0x20] sm:$0xff]   ;;  %s447_s15 = smov [#allocation7]  }
  0x29   :  { %309 = vmatpush3.bf16.msra.mxu0 %v336_v1  ;;  %v341_v6 = vld [vmem:[#allocation5 + $0x28] sm:$0xff]   ;;  %v342_v7 = vld [vmem:[#allocation5 + $0x30] sm:$0xff]   ;;  %v343_v8 = vld [vmem:[#allocation5 + $0x38] sm:$0xff]   ;;  %s253_s16 = sshll.u32 %s447_s15, 4  ;;  %s254_s16 = int_to_ptr.vmem [resolvable:$true] %s253_s16 }
  0x2a   :  { %310 = vmatprep.subr.bf16.mxu0 %v445_v0  ;;  %v344_v9 = vld [vmem:[#allocation2] sm:$0xff]   ;;  %s389_s17 = scalar_lea.vmem %s254_s16, 128  ;;  %p394_p3 = scmp.lt.s32.totalorder %s254_s16, %s254_s16 }
  0x2b   :  { %v280_v10 = vld [vmem:[%s536_s2] ss:$0 sm:$0xff]  ;;  %p390_p2 = scmp.ne.s32.totalorder %s254_s16, %s389_s17  ;;  %p395_p4 = scmp.lt.s32.totalorder %s389_s17, %s389_s17 }
  0x2d   :  { %311 = vmatpush3.bf16.msra.mxu0 %v337_v2  ;;  %p396_p5 = por %p395_p4, %p394_p3 }
  0x2e   :  { %312 = vmatprep.subr.bf16.mxu0 %v445_v0 }
  0x2f   :  { %p397_p6 = pnand %p396_p5, %p390_p2 }
  0x31   :  { %313 = vmatpush3.bf16.msra.mxu0 %v338_v3 }
  0x32   :  { %314 = vmatprep.subr.bf16.mxu0 %v445_v0 }
  0x35   :  { %315 = vmatpush3.bf16.msra.mxu0 %v339_v4 }
  0x36   :  { %316 = vmatprep.subr.bf16.mxu0 %v445_v0 }
  0x39   :  { %317 = vmatpush3.bf16.msra.mxu0 %v340_v5 }
  0x3a   :  { %318 = vmatprep.subr.bf16.mxu0 %v445_v0 }
  0x3d   :  { %319 = vmatpush3.bf16.msra.mxu0 %v341_v6 }
  0x3e   :  { %320 = vmatprep.subr.bf16.mxu0 %v445_v0 }
  0x41   :  { %321 = vmatpush3.bf16.msra.mxu0 %v342_v7 }
  0x42   :  { %322 = vmatprep.subr.bf16.mxu0 %v445_v0 }
  0x45   :  { %323 = vmatpush3.bf16.msra.mxu0 %v343_v8 }
  0x48   :  { %325 = vmatmul.mubr.bf16.vlgmr.msra.gmra.mrb[0].mxu0 %v344_v9 }
 0x11b   :  { %v160_v11 = vpop.f32.mrb[0].mxu0 }
 0x11c   :  { %v326_v12 = vpop.f32.mrb[1].mxu0  ;;  %v161_v14 = vadd.f32 %v280_v10, %v160_v11 }
 0x11d   :  { %v163_v13 = vpop.f32.mrb[2].mxu0 }
 0x11e   :  { %v164_v15 = vadd.f32 %v280_v10, %v163_v13  ;;  %v327_v16 = vpop.f32.mrb[3].mxu0 }
 0x120   :  { %v167_v17 = vpack.c.bf16 %v164_v15, %v161_v14 }
 0x122   :  { %v177_v18 = vunpack.c.l.bf16 %v167_v17  ;;  %v178_v19 = vunpack.c.h.bf16 %v167_v17  ;;  %298 = vst [vmem:[#allocation7] sm:$0xff] %v167_v17  }
 0x123   :  { %400 = shalt.err (!%p397_p6)
}
 0x124   :  { %s401_s19 = scalar_lea.hbm %s537_s3, 128 }
 0x125   :  { %p402_p7 = scmp.ne.s32.totalorder %s537_s3, %s401_s19  ;;  %p405_p8 = scmp.lt.u32.totalorder %s401_s19, %s537_s3 }
 0x127   :  { %p407_p9 = pnand %p405_p8, %p402_p7 }
 0x129   :  { %410 = shalt.err (!%p407_p9)
}
 0x12a   :  { %259 = dma.vmem_to_hbm [thread:$0]  %s254_s16, 128, %s537_s3, [#allocation4], %s442_s25, %s442_s25, %s443_s26   ;;  %v197_v20 = vmul.f32 0.0, %v178_v19  ;;  %v205_v22 = vmul.f32 %v177_v18, %v177_v18  ;;  %v183_v28 = vlaneseq }
 0x12b   :  { %s448_s3 = smov [#allocation8]  }
 0x12c   :  { %v198_v21 = vadd.f32 %v197_v20, %v177_v18  ;;  %v206_v23 = vmul.f32 %v197_v20, %v197_v20  ;;  %v184_v33 = vshrl.u32 %v183_v28, 7  ;;  %s266_s25 = sshll.u32 %s448_s3, 4  ;;  %s267_s25 = int_to_ptr.vmem [resolvable:$true] %s266_s25 }
 0x12d   :  { %s411_s26 = scalar_lea.vmem %s267_s25, 128  ;;  %p416_p11 = scmp.lt.s32.totalorder %s267_s25, %s267_s25 }
 0x12e   :  { %v199_v24 = vrot.slane %v198_v21, 4  ;;  %v207_v25 = vadd.f32 %v206_v23, %v205_v22  ;;  %vm214_vm1 = vcmp.eq.s32.totalorder %v184_v33, 0  ;;  %vm216_vm2 = vcmp.eq.s32.totalorder %v184_v33, 1  ;;  %p412_p10 = scmp.ne.s32.totalorder %s267_s25, %s411_s26  ;;  %p417_p12 = scmp.lt.s32.totalorder %s411_s26, %s411_s26 }
 0x130   :  { %v200_v26 = vadd.f32 %v199_v24, %v198_v21  ;;  %v208_v27 = vrot.slane %v207_v25, 4  ;;  %p418_p13 = por %p417_p12, %p416_p11 }
 0x132   :  { %v201_v29 = vrot.slane %v200_v26, 2  ;;  %v209_v30 = vadd.f32 %v208_v27, %v207_v25  ;;  %p419_p0 = pnand %p418_p13, %p412_p10 }
 0x134   :  { %v202_v31 = vadd.f32 %v201_v29, %v200_v26  ;;  %v210_v32 = vrot.slane %v209_v30, 2 }
 0x136   :  { %v203_v34 = vrot.slane %v202_v31, 1  ;;  %v211_v35 = vadd.f32 %v210_v32, %v209_v30 }
 0x138   :  { %v204_v36 = vadd.f32 %v203_v34, %v202_v31  ;;  %v212_v37 = vrot.slane %v211_v35, 1 }
 0x13a   :  { %v213_v38 = vadd.f32 %v212_v37, %v211_v35  ;;  %v215_v39 = vsel %vm214_vm1, %v204_v36, 0.0 }
 0x13c   :  { %v217_v40 = vsel %vm216_vm2, %v213_v38, 0.0 }
 0x13d   :  { %v218_v41 = vadd.f32 %v217_v40, %v215_v39 }
 0x13f   :  { %219 = vst [vmem:[#allocation8] sm:$0xff] %v218_v41 }
 0x140   :  { %422 = shalt.err (!%p419_p0)
}
 0x141   :  { %s423_s30 = scalar_lea.hbm %s538_s4, 128 }
 0x142   :  { %p424_p1 = scmp.ne.s32.totalorder %s538_s4, %s423_s30  ;;  %p427_p2 = scmp.lt.u32.totalorder %s423_s30, %s538_s4 }
 0x144   :  { %p429_p3 = pnand %p427_p2, %p424_p1 }
 0x146   :  { %432 = shalt.err (!%p429_p3)
}
 0x147   :  { %269 = dma.vmem_to_hbm [thread:$0]  %s267_s25, 128, %s538_s4, [#allocation9]  }
 0x148   :  { %437 = dma.done.wait [#allocation4], 128  }
 0x149   :  { %438 = vsyncadd [#allocation4], 4294967168 }
 0x14a   :  { %439 = dma.done.wait [#allocation9], 128  }
 0x14b   :  { %440 = vsyncadd [#allocation9], 4294967168 }
 0x14c   :  { %276 = vsyncpa [#allocation3], 1 }
 0x14d   :  { %277 = vsyncpa [#allocation6], 1 }
 0x14e   :  { %278 = vsyncpa [#allocation4], 1 }
 0x14f   :  { %279 = vsyncpa [#allocation9], 1 }

</bundles_post_ra>
